<compile_context>
chip_gen: v7x
topology: tpu7x:2x2x1
jax: 0.10.0
libtpu: 0.0.40
codegen_flags: <defaults>
</compile_context>

<pallas_src>
import functools
import math

import jax
import jax.numpy as jnp
from jax import lax
from jax.experimental import pallas as pl
from jax.experimental.pallas import tpu as pltpu

LN_EPS = 1e-5

# Stacked (leading layer axis) parameter order as passed to the kernel.
STACKED_ORDER = ("wqkv", "wo", "w1", "w2", "vecs")
# Row order inside the coalesced per-layer small-vector block (width 4*D).
VEC_ROWS = ("bqkv", "bo", "g1", "be1", "bb1", "bb2", "g2", "be2")


def _act_index_map(bb, l):
    # Activation / output block: constant along the layer axis -> the block
    # stays resident in VMEM across all layer steps (the carried activation).
    return (bb, 0, 0)


def _layer_index_map(bb, l):
    # Weight block: pick layer `l`; the changing index lets Pallas prefetch
    # layer l+1 weights while layer l computes.
    return (l, 0, 0)


# ----------------------------- Pallas kernel ------------------------------ #
def make_fused_kernel(n_head: int, matmul_dtype):
    approx_recip = matmul_dtype != jnp.float32   # exact math on the f32 path

    def kernel(x_ref, wqkv_ref, wo_ref, w1_ref, w2_ref, vecs_ref, o_ref):
        layer = pl.program_id(1)

        # Layer 0: seed the resident activation (the output block, carried in
        # VMEM across the whole "arbitrary" layer axis).
        @pl.when(layer == 0)
        def _():
            o_ref[...] = x_ref[...]

        Bb, L, D = o_ref.shape
        dh = D // n_head
        rows = Bb * L
        scale = jnp.float32(1.0 / math.sqrt(dh))
        mm = matmul_dtype

        # One coalesced (8, 4D) block of per-layer small vectors.
        vecs = vecs_ref[0]                                  # (8, 4D) f32
        bqkv = vecs[0:1, :3 * D]
        bo = vecs[1:2, :D]
        g1 = vecs[2:3, :D]
        be1 = vecs[3:4, :D]
        bb1 = vecs[4:5, :]                                  # (1, 4D)
        bb2 = vecs[5:6, :D]
        g2 = vecs[6:7, :D]
        be2 = vecs[7:8, :D]

        x = o_ref[...].astype(jnp.float32).reshape(rows, D)  # (rows, D)

        def mxu(a, w):  # 2-D matmul, operands in `mm`, f32 accumulation
            return jnp.dot(a.astype(mm), w.astype(mm),
                           preferred_element_type=jnp.float32)

        def layer_norm(h, g, b):
            mu = jnp.mean(h, axis=-1, keepdims=True)
            var = jnp.mean(jnp.square(h - mu), axis=-1, keepdims=True)
            return (h - mu) * lax.rsqrt(var + LN_EPS) * g + b

        # ---- fused QKV projection: one MXU pass with N = 3*D ----
        qkv = mxu(x, wqkv_ref[0]) + bqkv                    # (rows, 3D) f32
        qkv3 = qkv.reshape(Bb, L, 3 * D)

        # ---- multi-head self-attention (batched over the batch block) ----
        ctx_parts = []
        for h in range(n_head):
            lo = h * dh
            qh = (qkv3[:, :, lo:lo + dh] * scale).astype(mm)        # (Bb,L,dh)
            kh = qkv3[:, :, D + lo:D + lo + dh].astype(mm)
            vh = qkv3[:, :, 2 * D + lo:2 * D + lo + dh].astype(mm)
            s = jnp.einsum("bqd,bkd->bqk", qh, kh,
                           preferred_element_type=jnp.float32)      # (Bb,L,L)
            s = s - jnp.max(s, axis=-1, keepdims=True)
            p = jnp.exp(s)
            inv = pl.reciprocal(jnp.sum(p, axis=-1, keepdims=True),
                                approx=approx_recip)
            ch = jnp.einsum("bqk,bkd->bqd", p.astype(mm), vh,
                            preferred_element_type=jnp.float32)     # (Bb,L,dh)
            ctx_parts.append(ch * inv)
        # Lane-axis concat of per-head contexts, then ONE output projection
        # with contraction dim D (instead of n_head K=dh matmuls + f32 adds).
        ctx = jnp.concatenate(ctx_parts, axis=-1).reshape(rows, D)
        attn = mxu(ctx, wo_ref[0]) + bo                             # (rows, D)

        # ---- add & norm 1 ----
        h1 = layer_norm(x + attn, g1, be1)

        # ---- position-wise feed-forward (ReLU) ----
        f = jnp.maximum(mxu(h1, w1_ref[0]) + bb1, 0.0)              # (rows,4D)
        f = mxu(f, w2_ref[0]) + bb2                                 # (rows, D)

        # ---- add & norm 2 ----
        out = layer_norm(h1 + f, g2, be2)

        o_ref[...] = out.reshape(Bb, L, D).astype(o_ref.dtype)

    return kernel


def _vmem_estimate(block_b, L, D, n_head, matmul_bytes):
    """Rough per-core VMEM footprint (bytes) of one batch block."""
    rows = block_b * L
    ffn = 4 * D
    w = 2 * matmul_bytes * (D * 3 * D + D * D + D * ffn + ffn * D)  # 2x-buffered
    vec = 2 * 4 * 8 * ffn
    act = 2 * 2 * 4 * rows * D                 # in + out blocks, 2x-buffered f32
    inter = 4 * rows * (3 * D + ffn + 4 * D) + 4 * n_head * block_b * L * L
    return w + vec + act + inter


def transformer_layers_pallas(x, stacked, n_head, matmul_dtype=jnp.bfloat16,
                              block_b=None):
    """All encoder layers in a single pallas_call.

    grid = (batch_blocks, n_layers):
      axis 0 ("parallel"):  batch blocks (default B/2 so v7x's second
                            TensorCore gets work).
      axis 1 ("arbitrary"): layers — output block index constant along it, so
                            the activation is carried in VMEM layer-to-layer.
    """
    B, L, D = x.shape
    n_layers = stacked["wqkv"].shape[0]
    if block_b is None:
        block_b = B // 2 if (B >= 2 and B % 2 == 0) else B
    assert B % block_b == 0, "B must be divisible by block_b"

    ordered = [stacked[name] for name in STACKED_ORDER]
    in_specs = [pl.BlockSpec((block_b, L, D), _act_index_map)]
    in_specs += [pl.BlockSpec((1,) + arr.shape[1:], _layer_index_map)
                 for arr in ordered]

    mm_bytes = jnp.dtype(matmul_dtype).itemsize
    est = _vmem_estimate(block_b, L, D, n_head, mm_bytes)
    vmem_limit = int(min(max(2 * est, 16 * 1024 * 1024), 64 * 1024 * 1024))

    ffn = 4 * D
    flops = int(n_layers * B * L * (2 * D * (3 * D + D + 2 * ffn) + 4 * L * D))
    transcendentals = int(n_layers * B * n_head * L * L)
    bytes_accessed = int(sum(int(a.size) * a.dtype.itemsize for a in ordered)
                         + 2 * int(x.size) * x.dtype.itemsize)

    return pl.pallas_call(
        make_fused_kernel(n_head, matmul_dtype),
        out_shape=jax.ShapeDtypeStruct((B, L, D), x.dtype),
        grid=(B // block_b, n_layers),
        in_specs=in_specs,
        out_specs=pl.BlockSpec((block_b, L, D), _act_index_map),
        compiler_params=pltpu.CompilerParams(
            dimension_semantics=("parallel", "arbitrary"),
            vmem_limit_bytes=vmem_limit),
        cost_estimate=pl.CostEstimate(flops=flops,
                                      transcendentals=transcendentals,
                                      bytes_accessed=bytes_accessed),
    )(x, *ordered)


# ------------------------- parameter construction ------------------------- #
def sinusoidal_pos_encoding(max_len, d_model):
    pos = jnp.arange(max_len, dtype=jnp.float32)[:, None]
    idx = jnp.arange(0, d_model, 2, dtype=jnp.float32)[None, :]
    angle = pos / jnp.power(10000.0, idx / d_model)
    pe = jnp.zeros((max_len, d_model), jnp.float32)
    pe = pe.at[:, 0::2].set(jnp.sin(angle))
    pe = pe.at[:, 1::2].set(jnp.cos(angle))
    return pe


def init_params(key, vocab_size, max_len, n_layers, d_model):
    ffn_hidden = 4 * d_model
    keys = jax.random.split(key, 1 + n_layers)
    tok_emb = jax.random.normal(keys[0], (vocab_size, d_model), jnp.float32) * 0.02
    pos_enc = sinusoidal_pos_encoding(max_len, d_model)

    def uni(k, shape, bound):
        return jax.random.uniform(k, shape, jnp.float32, -bound, bound)

    layers = []
    for li in range(n_layers):
        ks = jax.random.split(keys[1 + li], 12)
        s_d = 1.0 / math.sqrt(d_model)
        s_h = 1.0 / math.sqrt(ffn_hidden)
        layers.append({
            "wq": uni(ks[0], (d_model, d_model), s_d),
            "bq": uni(ks[1], (1, d_model), s_d),
            "wk": uni(ks[2], (d_model, d_model), s_d),
            "bk": uni(ks[3], (1, d_model), s_d),
            "wv": uni(ks[4], (d_model, d_model), s_d),
            "bv": uni(ks[5], (1, d_model), s_d),
            "wo": uni(ks[6], (d_model, d_model), s_d),
            "bo": uni(ks[7], (1, d_model), s_d),
            "g1": jnp.ones((1, d_model), jnp.float32),
            "be1": jnp.zeros((1, d_model), jnp.float32),
            "w1": uni(ks[8], (d_model, ffn_hidden), s_d),
            "bb1": uni(ks[9], (1, ffn_hidden), s_d),
            "w2": uni(ks[10], (ffn_hidden, d_model), s_h),
            "bb2": uni(ks[11], (1, d_model), s_h),
            "g2": jnp.ones((1, d_model), jnp.float32),
            "be2": jnp.zeros((1, d_model), jnp.float32),
        })
    return tok_emb, pos_enc, layers


def stack_layer_params(layers, matmul_dtype=jnp.bfloat16):
    """Stack per-layer params with a leading layer axis.

    Matmul weights (wqkv fused, wo, w1, w2) are pre-cast ONCE to matmul_dtype;
    all small vectors are coalesced into one (n_layers, 8, 4D) f32 block.
    """
    d_model = layers[0]["wq"].shape[0]
    ffn = 4 * d_model

    def pad_row(v):                          # (1, k) -> (1, ffn)
        return jnp.pad(v, ((0, 0), (0, ffn - v.shape[1])))

    wqkv, wo, w1, w2, vecs = [], [], [], [], []
    for lp in layers:
        wqkv.append(jnp.concatenate([lp["wq"], lp["wk"], lp["wv"]], axis=1))
        wo.append(lp["wo"])
        w1.append(lp["w1"])
        w2.append(lp["w2"])
        bqkv = jnp.concatenate([lp["bq"], lp["bk"], lp["bv"]], axis=1)
        rows = [bqkv, lp["bo"], lp["g1"], lp["be1"], lp["bb1"],
                lp["bb2"], lp["g2"], lp["be2"]]
        vecs.append(jnp.concatenate([pad_row(r) for r in rows], axis=0))
    return {
        "wqkv": jnp.stack(wqkv).astype(matmul_dtype),
        "wo": jnp.stack(wo).astype(matmul_dtype),
        "w1": jnp.stack(w1).astype(matmul_dtype),
        "w2": jnp.stack(w2).astype(matmul_dtype),
        "vecs": jnp.stack(vecs),                      # f32
    }


# ----------------------------- full forward ------------------------------- #
def transformer_forward(ids, tok_emb, pos_enc, stacked, n_head,
                        matmul_dtype=jnp.bfloat16):
    B, L = ids.shape
    # Embedding (gather) + positional encoding: plain-JAX glue.
    x = jnp.take(tok_emb, ids, axis=0) + pos_enc[None, :L, :]
    return transformer_layers_pallas(x, stacked, n_head, matmul_dtype)


# Pure-JAX reference for correctness checks.
def reference_forward(ids, tok_emb, pos_enc, layers, n_head):
    B, L = ids.shape
    x = jnp.take(tok_emb, ids, axis=0) + pos_enc[None, :L, :]
    for lp in layers:
        D = x.shape[-1]
        dh = D // n_head
        q = x @ lp["wq"] + lp["bq"][0]
        k = x @ lp["wk"] + lp["bk"][0]
        v = x @ lp["wv"] + lp["bv"][0]
        qh = q.reshape(B, L, n_head, dh).transpose(0, 2, 1, 3)
        kh = k.reshape(B, L, n_head, dh).transpose(0, 2, 1, 3)
        vh = v.reshape(B, L, n_head, dh).transpose(0, 2, 1, 3)
        s = jnp.einsum("bhqd,bhkd->bhqk", qh, kh) / jnp.sqrt(jnp.float32(dh))
        p = jax.nn.softmax(s, axis=-1)
        attn = jnp.einsum("bhqk,bhkd->bhqd", p, vh).transpose(0, 2, 1, 3).reshape(B, L, D)
        attn = attn @ lp["wo"] + lp["bo"][0]

        h1 = x + attn
        mu = h1.mean(-1, keepdims=True)
        var = ((h1 - mu) ** 2).mean(-1, keepdims=True)
        h1n = (h1 - mu) * jax.lax.rsqrt(var + LN_EPS) * lp["g1"][0] + lp["be1"][0]

        f = jnp.maximum(h1n @ lp["w1"] + lp["bb1"][0], 0.0) @ lp["w2"] + lp["bb2"][0]
        h2 = h1n + f
        mu2 = h2.mean(-1, keepdims=True)
        var2 = ((h2 - mu2) ** 2).mean(-1, keepdims=True)
        x = (h2 - mu2) * jax.lax.rsqrt(var2 + LN_EPS) * lp["g2"][0] + lp["be2"][0]
    return x


if __name__ == "__main__":
    # Small, deterministic configuration.
    vocab_size, max_len = 100, 64
    n_layers, d_model, n_head = 2, 32, 4
    batch, length = 2, 8

    key = jax.random.PRNGKey(0)
    k_param, k_ids = jax.random.split(key)
    tok_emb, pos_enc, layers = init_params(k_param, vocab_size, max_len,
                                           n_layers, d_model)
    ids = jax.random.randint(k_ids, (batch, length), 0, vocab_size,
                             dtype=jnp.int32)

    # High-precision pure-JAX reference.
    with jax.default_matmul_precision("float32"):
        ref = reference_forward(ids, tok_emb, pos_enc, layers, n_head)

    # f32 MXU path — exact math, tight tolerance.
    stacked_f32 = stack_layer_params(layers, jnp.float32)
    fwd_f32 = jax.jit(functools.partial(transformer_forward, n_head=n_head,
                                        matmul_dtype=jnp.float32))
    out_f32 = jax.block_until_ready(fwd_f32(ids, tok_emb, pos_enc, stacked_f32))
    assert out_f32.shape == (batch, length, d_model)
    assert jnp.allclose(out_f32, ref, rtol=1e-3, atol=1e-3), "f32 mismatch"

    # bf16-operand MXU fast path (default): f32 accumulation / softmax / LN.
    # NOTE: pl.reciprocal(approx=True) means the softmax denominator will not
    # bit-match a reference softmax; covered by the 5e-2 tolerance.
    stacked_bf16 = stack_layer_params(layers, jnp.bfloat16)
    fwd_bf16 = jax.jit(functools.partial(transformer_forward, n_head=n_head))
    out_bf16 = jax.block_until_ready(fwd_bf16(ids, tok_emb, pos_enc, stacked_bf16))
    assert out_bf16.shape == (batch, length, d_model)
    assert jnp.allclose(out_bf16, ref, rtol=5e-2, atol=5e-2), "bf16 mismatch"

    print("KERNEL_OK")
</pallas_src>

<mosaic_0001>
module attributes {stable_mosaic.version = 11 : i64} {
  func.func @kernel(%arg0: i32, %arg1: i32, %arg2: memref<1x8x32xf32, #tpu.memory_space<vmem>>, %arg3: memref<1x32x96xf32, #tpu.memory_space<vmem>>, %arg4: memref<1x32x32xf32, #tpu.memory_space<vmem>>, %arg5: memref<1x32x128xf32, #tpu.memory_space<vmem>>, %arg6: memref<1x128x32xf32, #tpu.memory_space<vmem>>, %arg7: memref<1x8x128xf32, #tpu.memory_space<vmem>>, %arg8: memref<1x8x32xf32, #tpu.memory_space<vmem>>) attributes {dimension_semantics = [#tpu.dimension_semantics<parallel>, #tpu.dimension_semantics<arbitrary>], iteration_bounds = array<i64: 2, 2>, scalar_prefetch = 0 : i64, scratch_operands = 0 : i64, tpu.core_type = #tpu.core_type<tc>, window_params = [{transform_indices = @transform_0, window_bounds = array<i64: 1, 8, 32>}, {transform_indices = @transform_1, window_bounds = array<i64: 1, 32, 96>}, {transform_indices = @transform_2, window_bounds = array<i64: 1, 32, 32>}, {transform_indices = @transform_3, window_bounds = array<i64: 1, 32, 128>}, {transform_indices = @transform_4, window_bounds = array<i64: 1, 128, 32>}, {transform_indices = @transform_5, window_bounds = array<i64: 1, 8, 128>}, {transform_indices = @transform_6, window_bounds = array<i64: 1, 8, 32>}]} {
    %c0_i32 = arith.constant 0 : i32
    %0 = arith.cmpi eq, %arg1, %c0_i32 : i32
    %1 = arith.extui %0 : i1 to i32
    %c0_i32_0 = arith.constant 0 : i32
    %2 = arith.cmpi ne, %1, %c0_i32_0 : i32
    scf.if %2 {
      %c0_55 = arith.constant 0 : index
      %c0_56 = arith.constant 0 : index
      %c0_57 = arith.constant 0 : index
      %156 = vector.load %arg2[%c0_55, %c0_56, %c0_57] : memref<1x8x32xf32, #tpu.memory_space<vmem>>, vector<1x8x32xf32>
      %c0_58 = arith.constant 0 : index
      %c0_59 = arith.constant 0 : index
      %c0_60 = arith.constant 0 : index
      %157 = vector.load %arg8[%c0_58, %c0_59, %c0_60] : memref<1x8x32xf32, #tpu.memory_space<vmem>>, vector<1x8x32xf32>
      tpu.vector_store %arg8[%c0_58, %c0_59, %c0_60], %156 {strides = array<i32>} : memref<1x8x32xf32, #tpu.memory_space<vmem>>, vector<1x8x32xf32>,
    } else {
    }
    %c0 = arith.constant 0 : index
    %c0_1 = arith.constant 0 : index
    %c0_2 = arith.constant 0 : index
    %3 = vector.load %arg7[%c0, %c0_1, %c0_2] : memref<1x8x128xf32, #tpu.memory_space<vmem>>, vector<1x8x128xf32>
    %4 = vector.shape_cast %3 : vector<1x8x128xf32> to vector<8x128xf32>
    %5 = vector.extract_strided_slice %4 {offsets = [0, 0], sizes = [1, 96], strides = [1, 1]} : vector<8x128xf32> to vector<1x96xf32>
    %6 = vector.extract_strided_slice %4 {offsets = [1, 0], sizes = [1, 32], strides = [1, 1]} : vector<8x128xf32> to vector<1x32xf32>
    %7 = vector.extract_strided_slice %4 {offsets = [2, 0], sizes = [1, 32], strides = [1, 1]} : vector<8x128xf32> to vector<1x32xf32>
    %8 = vector.extract_strided_slice %4 {offsets = [3, 0], sizes = [1, 32], strides = [1, 1]} : vector<8x128xf32> to vector<1x32xf32>
    %9 = vector.extract_strided_slice %4 {offsets = [4, 0], sizes = [1, 128], strides = [1, 1]} : vector<8x128xf32> to vector<1x128xf32>
    %10 = vector.extract_strided_slice %4 {offsets = [5, 0], sizes = [1, 32], strides = [1, 1]} : vector<8x128xf32> to vector<1x32xf32>
    %11 = vector.extract_strided_slice %4 {offsets = [6, 0], sizes = [1, 32], strides = [1, 1]} : vector<8x128xf32> to vector<1x32xf32>
    %12 = vector.extract_strided_slice %4 {offsets = [7, 0], sizes = [1, 32], strides = [1, 1]} : vector<8x128xf32> to vector<1x32xf32>
    %c0_3 = arith.constant 0 : index
    %c0_4 = arith.constant 0 : index
    %c0_5 = arith.constant 0 : index
    %13 = vector.load %arg8[%c0_3, %c0_4, %c0_5] : memref<1x8x32xf32, #tpu.memory_space<vmem>>, vector<1x8x32xf32>
    %14 = vector.shape_cast %13 : vector<1x8x32xf32> to vector<8x32xf32>
    %c0_6 = arith.constant 0 : index
    %c0_7 = arith.constant 0 : index
    %c0_8 = arith.constant 0 : index
    %15 = vector.load %arg3[%c0_6, %c0_7, %c0_8] : memref<1x32x96xf32, #tpu.memory_space<vmem>>, vector<1x32x96xf32>
    %16 = vector.shape_cast %15 : vector<1x32x96xf32> to vector<32x96xf32>
    %cst = arith.constant dense<0.000000e+00> : vector<8x96xf32>
    %17 = tpu.matmul %14, %16, %cst {dimension_numbers = #tpu.dot_dimension_numbers<[1], [0], [0], [1], [0, 0, 1, 1], [], []>} : vector<8x32xf32>, vector<32x96xf32>, vector<8x96xf32> -> vector<8x96xf32>
    %18 = vector.broadcast %5 : vector<1x96xf32> to vector<8x96xf32>
    %19 = arith.addf %17, %18 : vector<8x96xf32>
    %20 = vector.shape_cast %19 : vector<8x96xf32> to vector<1x8x96xf32>
    %21 = vector.extract_strided_slice %20 {offsets = [0, 0, 0], sizes = [1, 8, 8], strides = [1, 1, 1]} : vector<1x8x96xf32> to vector<1x8x8xf32>
    %cst_9 = arith.constant 0.353553385 : f32
    %22 = vector.broadcast %cst_9 : f32 to vector<1x8x8xf32>
    %23 = arith.mulf %21, %22 : vector<1x8x8xf32>
    %24 = vector.extract_strided_slice %20 {offsets = [0, 0, 32], sizes = [1, 8, 8], strides = [1, 1, 1]} : vector<1x8x96xf32> to vector<1x8x8xf32>
    %25 = vector.extract_strided_slice %20 {offsets = [0, 0, 64], sizes = [1, 8, 8], strides = [1, 1, 1]} : vector<1x8x96xf32> to vector<1x8x8xf32>
    "tpu.trace_start"() <{level = 10 : i32, message = "bqd,bkd->bqk"}> : () -> ()
    %cst_10 = arith.constant dense<0.000000e+00> : vector<1x8x8xf32>
    %26 = tpu.matmul %23, %24, %cst_10 {dimension_numbers = #tpu.dot_dimension_numbers<[2], [2], [1], [1], [0, 0, 0, 1, 1, 1], [0], [0]>} : vector<1x8x8xf32>, vector<1x8x8xf32>, vector<1x8x8xf32> -> vector<1x8x8xf32>
    "tpu.trace_stop"() : () -> ()
    %cst_11 = arith.constant dense<0xFF800000> : vector<1x8xf32>
    %27 = vector.multi_reduction <maximumf>, %26, %cst_11 [2] : vector<1x8x8xf32> to vector<1x8xf32>
    %28 = vector.shape_cast %27 : vector<1x8xf32> to vector<1x8x1xf32>
    %29 = vector.broadcast %28 : vector<1x8x1xf32> to vector<1x8x8xf32>
    %30 = arith.subf %26, %29 : vector<1x8x8xf32>
    %31 = math.exp %30 : vector<1x8x8xf32>
    %cst_12 = arith.constant dense<0.000000e+00> : vector<1x8xf32>
    %32 = vector.multi_reduction <add>, %31, %cst_12 [2] : vector<1x8x8xf32> to vector<1x8xf32>
    %33 = vector.shape_cast %32 : vector<1x8xf32> to vector<1x8x1xf32>
    %34 = tpu.reciprocal %33 : vector<1x8x1xf32> -> vector<1x8x1xf32>
    "tpu.trace_start"() <{level = 10 : i32, message = "bqk,bkd->bqd"}> : () -> ()
    %cst_13 = arith.constant dense<0.000000e+00> : vector<1x8x8xf32>
    %35 = tpu.matmul %31, %25, %cst_13 {dimension_numbers = #tpu.dot_dimension_numbers<[2], [1], [1], [2], [0, 0, 0, 1, 1, 2], [0], [0]>} : vector<1x8x8xf32>, vector<1x8x8xf32>, vector<1x8x8xf32> -> vector<1x8x8xf32>
    "tpu.trace_stop"() : () -> ()
    %36 = vector.broadcast %34 : vector<1x8x1xf32> to vector<1x8x8xf32>
    %37 = arith.mulf %35, %36 : vector<1x8x8xf32>
    %38 = vector.extract_strided_slice %20 {offsets = [0, 0, 8], sizes = [1, 8, 8], strides = [1, 1, 1]} : vector<1x8x96xf32> to vector<1x8x8xf32>
    %cst_14 = arith.constant 0.353553385 : f32
    %39 = vector.broadcast %cst_14 : f32 to vector<1x8x8xf32>
    %40 = arith.mulf %38, %39 : vector<1x8x8xf32>
    %41 = vector.extract_strided_slice %20 {offsets = [0, 0, 40], sizes = [1, 8, 8], strides = [1, 1, 1]} : vector<1x8x96xf32> to vector<1x8x8xf32>
    %42 = vector.extract_strided_slice %20 {offsets = [0, 0, 72], sizes = [1, 8, 8], strides = [1, 1, 1]} : vector<1x8x96xf32> to vector<1x8x8xf32>
    "tpu.trace_start"() <{level = 10 : i32, message = "bqd,bkd->bqk"}> : () -> ()
    %cst_15 = arith.constant dense<0.000000e+00> : vector<1x8x8xf32>
    %43 = tpu.matmul %40, %41, %cst_15 {dimension_numbers = #tpu.dot_dimension_numbers<[2], [2], [1], [1], [0, 0, 0, 1, 1, 1], [0], [0]>} : vector<1x8x8xf32>, vector<1x8x8xf32>, vector<1x8x8xf32> -> vector<1x8x8xf32>
    "tpu.trace_stop"() : () -> ()
    %cst_16 = arith.constant dense<0xFF800000> : vector<1x8xf32>
    %44 = vector.multi_reduction <maximumf>, %43, %cst_16 [2] : vector<1x8x8xf32> to vector<1x8xf32>
    %45 = vector.shape_cast %44 : vector<1x8xf32> to vector<1x8x1xf32>
    %46 = vector.broadcast %45 : vector<1x8x1xf32> to vector<1x8x8xf32>
    %47 = arith.subf %43, %46 : vector<1x8x8xf32>
    %48 = math.exp %47 : vector<1x8x8xf32>
    %cst_17 = arith.constant dense<0.000000e+00> : vector<1x8xf32>
    %49 = vector.multi_reduction <add>, %48, %cst_17 [2] : vector<1x8x8xf32> to vector<1x8xf32>
    %50 = vector.shape_cast %49 : vector<1x8xf32> to vector<1x8x1xf32>
    %51 = tpu.reciprocal %50 : vector<1x8x1xf32> -> vector<1x8x1xf32>
    "tpu.trace_start"() <{level = 10 : i32, message = "bqk,bkd->bqd"}> : () -> ()
    %cst_18 = arith.constant dense<0.000000e+00> : vector<1x8x8xf32>
    %52 = tpu.matmul %48, %42, %cst_18 {dimension_numbers = #tpu.dot_dimension_numbers<[2], [1], [1], [2], [0, 0, 0, 1, 1, 2], [0], [0]>} : vector<1x8x8xf32>, vector<1x8x8xf32>, vector<1x8x8xf32> -> vector<1x8x8xf32>
    "tpu.trace_stop"() : () -> ()
    %53 = vector.broadcast %51 : vector<1x8x1xf32> to vector<1x8x8xf32>
    %54 = arith.mulf %52, %53 : vector<1x8x8xf32>
    %55 = vector.extract_strided_slice %20 {offsets = [0, 0, 16], sizes = [1, 8, 8], strides = [1, 1, 1]} : vector<1x8x96xf32> to vector<1x8x8xf32>
    %cst_19 = arith.constant 0.353553385 : f32
    %56 = vector.broadcast %cst_19 : f32 to vector<1x8x8xf32>
    %57 = arith.mulf %55, %56 : vector<1x8x8xf32>
    %58 = vector.extract_strided_slice %20 {offsets = [0, 0, 48], sizes = [1, 8, 8], strides = [1, 1, 1]} : vector<1x8x96xf32> to vector<1x8x8xf32>
    %59 = vector.extract_strided_slice %20 {offsets = [0, 0, 80], sizes = [1, 8, 8], strides = [1, 1, 1]} : vector<1x8x96xf32> to vector<1x8x8xf32>
    "tpu.trace_start"() <{level = 10 : i32, message = "bqd,bkd->bqk"}> : () -> ()
    %cst_20 = arith.constant dense<0.000000e+00> : vector<1x8x8xf32>
    %60 = tpu.matmul %57, %58, %cst_20 {dimension_numbers = #tpu.dot_dimension_numbers<[2], [2], [1], [1], [0, 0, 0, 1, 1, 1], [0], [0]>} : vector<1x8x8xf32>, vector<1x8x8xf32>, vector<1x8x8xf32> -> vector<1x8x8xf32>
    "tpu.trace_stop"() : () -> ()
    %cst_21 = arith.constant dense<0xFF800000> : vector<1x8xf32>
    %61 = vector.multi_reduction <maximumf>, %60, %cst_21 [2] : vector<1x8x8xf32> to vector<1x8xf32>
    %62 = vector.shape_cast %61 : vector<1x8xf32> to vector<1x8x1xf32>
    %63 = vector.broadcast %62 : vector<1x8x1xf32> to vector<1x8x8xf32>
    %64 = arith.subf %60, %63 : vector<1x8x8xf32>
    %65 = math.exp %64 : vector<1x8x8xf32>
    %cst_22 = arith.constant dense<0.000000e+00> : vector<1x8xf32>
    %66 = vector.multi_reduction <add>, %65, %cst_22 [2] : vector<1x8x8xf32> to vector<1x8xf32>
    %67 = vector.shape_cast %66 : vector<1x8xf32> to vector<1x8x1xf32>
    %68 = tpu.reciprocal %67 : vector<1x8x1xf32> -> vector<1x8x1xf32>
    "tpu.trace_start"() <{level = 10 : i32, message = "bqk,bkd->bqd"}> : () -> ()
    %cst_23 = arith.constant dense<0.000000e+00> : vector<1x8x8xf32>
    %69 = tpu.matmul %65, %59, %cst_23 {dimension_numbers = #tpu.dot_dimension_numbers<[2], [1], [1], [2], [0, 0, 0, 1, 1, 2], [0], [0]>} : vector<1x8x8xf32>, vector<1x8x8xf32>, vector<1x8x8xf32> -> vector<1x8x8xf32>
    "tpu.trace_stop"() : () -> ()
    %70 = vector.broadcast %68 : vector<1x8x1xf32> to vector<1x8x8xf32>
    %71 = arith.mulf %69, %70 : vector<1x8x8xf32>
    %72 = vector.extract_strided_slice %20 {offsets = [0, 0, 24], sizes = [1, 8, 8], strides = [1, 1, 1]} : vector<1x8x96xf32> to vector<1x8x8xf32>
    %cst_24 = arith.constant 0.353553385 : f32
    %73 = vector.broadcast %cst_24 : f32 to vector<1x8x8xf32>
    %74 = arith.mulf %72, %73 : vector<1x8x8xf32>
    %75 = vector.extract_strided_slice %20 {offsets = [0, 0, 56], sizes = [1, 8, 8], strides = [1, 1, 1]} : vector<1x8x96xf32> to vector<1x8x8xf32>
    %76 = vector.extract_strided_slice %20 {offsets = [0, 0, 88], sizes = [1, 8, 8], strides = [1, 1, 1]} : vector<1x8x96xf32> to vector<1x8x8xf32>
    "tpu.trace_start"() <{level = 10 : i32, message = "bqd,bkd->bqk"}> : () -> ()
    %cst_25 = arith.constant dense<0.000000e+00> : vector<1x8x8xf32>
    %77 = tpu.matmul %74, %75, %cst_25 {dimension_numbers = #tpu.dot_dimension_numbers<[2], [2], [1], [1], [0, 0, 0, 1, 1, 1], [0], [0]>} : vector<1x8x8xf32>, vector<1x8x8xf32>, vector<1x8x8xf32> -> vector<1x8x8xf32>
    "tpu.trace_stop"() : () -> ()
    %cst_26 = arith.constant dense<0xFF800000> : vector<1x8xf32>
    %78 = vector.multi_reduction <maximumf>, %77, %cst_26 [2] : vector<1x8x8xf32> to vector<1x8xf32>
    %79 = vector.shape_cast %78 : vector<1x8xf32> to vector<1x8x1xf32>
    %80 = vector.broadcast %79 : vector<1x8x1xf32> to vector<1x8x8xf32>
    %81 = arith.subf %77, %80 : vector<1x8x8xf32>
    %82 = math.exp %81 : vector<1x8x8xf32>
    %cst_27 = arith.constant dense<0.000000e+00> : vector<1x8xf32>
    %83 = vector.multi_reduction <add>, %82, %cst_27 [2] : vector<1x8x8xf32> to vector<1x8xf32>
    %84 = vector.shape_cast %83 : vector<1x8xf32> to vector<1x8x1xf32>
    %85 = tpu.reciprocal %84 : vector<1x8x1xf32> -> vector<1x8x1xf32>
    "tpu.trace_start"() <{level = 10 : i32, message = "bqk,bkd->bqd"}> : () -> ()
    %cst_28 = arith.constant dense<0.000000e+00> : vector<1x8x8xf32>
    %86 = tpu.matmul %82, %76, %cst_28 {dimension_numbers = #tpu.dot_dimension_numbers<[2], [1], [1], [2], [0, 0, 0, 1, 1, 2], [0], [0]>} : vector<1x8x8xf32>, vector<1x8x8xf32>, vector<1x8x8xf32> -> vector<1x8x8xf32>
    "tpu.trace_stop"() : () -> ()
    %87 = vector.broadcast %85 : vector<1x8x1xf32> to vector<1x8x8xf32>
    %88 = arith.mulf %86, %87 : vector<1x8x8xf32>
    %89 = tpu.concatenate %37, %54, %71, %88 in 2 : vector<1x8x8xf32>, vector<1x8x8xf32>, vector<1x8x8xf32>, vector<1x8x8xf32> -> vector<1x8x32xf32>
    %90 = vector.shape_cast %89 : vector<1x8x32xf32> to vector<8x32xf32>
    %c0_29 = arith.constant 0 : index
    %c0_30 = arith.constant 0 : index
    %c0_31 = arith.constant 0 : index
    %91 = vector.load %arg4[%c0_29, %c0_30, %c0_31] : memref<1x32x32xf32, #tpu.memory_space<vmem>>, vector<1x32x32xf32>
    %92 = vector.shape_cast %91 : vector<1x32x32xf32> to vector<32x32xf32>
    %cst_32 = arith.constant dense<0.000000e+00> : vector<8x32xf32>
    %93 = tpu.matmul %90, %92, %cst_32 {dimension_numbers = #tpu.dot_dimension_numbers<[1], [0], [0], [1], [0, 0, 1, 1], [], []>} : vector<8x32xf32>, vector<32x32xf32>, vector<8x32xf32> -> vector<8x32xf32>
    %94 = vector.broadcast %6 : vector<1x32xf32> to vector<8x32xf32>
    %95 = arith.addf %93, %94 : vector<8x32xf32>
    %96 = arith.addf %14, %95 : vector<8x32xf32>
    %cst_33 = arith.constant dense<0.000000e+00> : vector<8xf32>
    %97 = vector.multi_reduction <add>, %96, %cst_33 [1] : vector<8x32xf32> to vector<8xf32>
    %98 = vector.shape_cast %97 : vector<8xf32> to vector<8x1xf32>
    %cst_34 = arith.constant 3.200000e+01 : f32
    %99 = vector.broadcast %cst_34 : f32 to vector<8x1xf32>
    %100 = arith.divf %98, %99 : vector<8x1xf32>
    %101 = vector.broadcast %100 : vector<8x1xf32> to vector<8x32xf32>
    %102 = arith.subf %96, %101 : vector<8x32xf32>
    %103 = arith.mulf %102, %102 : vector<8x32xf32>
    %cst_35 = arith.constant dense<0.000000e+00> : vector<8xf32>
    %104 = vector.multi_reduction <add>, %103, %cst_35 [1] : vector<8x32xf32> to vector<8xf32>
    %105 = vector.shape_cast %104 : vector<8xf32> to vector<8x1xf32>
    %cst_36 = arith.constant 3.200000e+01 : f32
    %106 = vector.broadcast %cst_36 : f32 to vector<8x1xf32>
    %107 = arith.divf %105, %106 : vector<8x1xf32>
    %108 = vector.broadcast %100 : vector<8x1xf32> to vector<8x32xf32>
    %109 = arith.subf %96, %108 : vector<8x32xf32>
    %cst_37 = arith.constant 9.99999974E-6 : f32
    %110 = vector.broadcast %cst_37 : f32 to vector<8x1xf32>
    %111 = arith.addf %107, %110 : vector<8x1xf32>
    %112 = math.rsqrt %111 : vector<8x1xf32>
    %113 = vector.broadcast %112 : vector<8x1xf32> to vector<8x32xf32>
    %114 = arith.mulf %109, %113 : vector<8x32xf32>
    %115 = vector.broadcast %7 : vector<1x32xf32> to vector<8x32xf32>
    %116 = arith.mulf %114, %115 : vector<8x32xf32>
    %117 = vector.broadcast %8 : vector<1x32xf32> to vector<8x32xf32>
    %118 = arith.addf %116, %117 : vector<8x32xf32>
    %c0_38 = arith.constant 0 : index
    %c0_39 = arith.constant 0 : index
    %c0_40 = arith.constant 0 : index
    %119 = vector.load %arg5[%c0_38, %c0_39, %c0_40] : memref<1x32x128xf32, #tpu.memory_space<vmem>>, vector<1x32x128xf32>
    %120 = vector.shape_cast %119 : vector<1x32x128xf32> to vector<32x128xf32>
    %cst_41 = arith.constant dense<0.000000e+00> : vector<8x128xf32>
    %121 = tpu.matmul %118, %120, %cst_41 {dimension_numbers = #tpu.dot_dimension_numbers<[1], [0], [0], [1], [0, 0, 1, 1], [], []>} : vector<8x32xf32>, vector<32x128xf32>, vector<8x128xf32> -> vector<8x128xf32>
    %122 = vector.broadcast %9 : vector<1x128xf32> to vector<8x128xf32>
    %123 = arith.addf %121, %122 : vector<8x128xf32>
    %cst_42 = arith.constant 0.000000e+00 : f32
    %124 = vector.broadcast %cst_42 : f32 to vector<8x128xf32>
    %125 = arith.maximumf %123, %124 : vector<8x128xf32>
    %c0_43 = arith.constant 0 : index
    %c0_44 = arith.constant 0 : index
    %c0_45 = arith.constant 0 : index
    %126 = vector.load %arg6[%c0_43, %c0_44, %c0_45] : memref<1x128x32xf32, #tpu.memory_space<vmem>>, vector<1x128x32xf32>
    %127 = vector.shape_cast %126 : vector<1x128x32xf32> to vector<128x32xf32>
    %cst_46 = arith.constant dense<0.000000e+00> : vector<8x32xf32>
    %128 = tpu.matmul %125, %127, %cst_46 {dimension_numbers = #tpu.dot_dimension_numbers<[1], [0], [0], [1], [0, 0, 1, 1], [], []>} : vector<8x128xf32>, vector<128x32xf32>, vector<8x32xf32> -> vector<8x32xf32>
    %129 = vector.broadcast %10 : vector<1x32xf32> to vector<8x32xf32>
    %130 = arith.addf %128, %129 : vector<8x32xf32>
    %131 = arith.addf %118, %130 : vector<8x32xf32>
    %cst_47 = arith.constant dense<0.000000e+00> : vector<8xf32>
    %132 = vector.multi_reduction <add>, %131, %cst_47 [1] : vector<8x32xf32> to vector<8xf32>
    %133 = vector.shape_cast %132 : vector<8xf32> to vector<8x1xf32>
    %cst_48 = arith.constant 3.200000e+01 : f32
    %134 = vector.broadcast %cst_48 : f32 to vector<8x1xf32>
    %135 = arith.divf %133, %134 : vector<8x1xf32>
    %136 = vector.broadcast %135 : vector<8x1xf32> to vector<8x32xf32>
    %137 = arith.subf %131, %136 : vector<8x32xf32>
    %138 = arith.mulf %137, %137 : vector<8x32xf32>
    %cst_49 = arith.constant dense<0.000000e+00> : vector<8xf32>
    %139 = vector.multi_reduction <add>, %138, %cst_49 [1] : vector<8x32xf32> to vector<8xf32>
    %140 = vector.shape_cast %139 : vector<8xf32> to vector<8x1xf32>
    %cst_50 = arith.constant 3.200000e+01 : f32
    %141 = vector.broadcast %cst_50 : f32 to vector<8x1xf32>
    %142 = arith.divf %140, %141 : vector<8x1xf32>
    %143 = vector.broadcast %135 : vector<8x1xf32> to vector<8x32xf32>
    %144 = arith.subf %131, %143 : vector<8x32xf32>
    %cst_51 = arith.constant 9.99999974E-6 : f32
    %145 = vector.broadcast %cst_51 : f32 to vector<8x1xf32>
    %146 = arith.addf %142, %145 : vector<8x1xf32>
    %147 = math.rsqrt %146 : vector<8x1xf32>
    %148 = vector.broadcast %147 : vector<8x1xf32> to vector<8x32xf32>
    %149 = arith.mulf %144, %148 : vector<8x32xf32>
    %150 = vector.broadcast %11 : vector<1x32xf32> to vector<8x32xf32>
    %151 = arith.mulf %149, %150 : vector<8x32xf32>
    %152 = vector.broadcast %12 : vector<1x32xf32> to vector<8x32xf32>
    %153 = arith.addf %151, %152 : vector<8x32xf32>
    %154 = vector.shape_cast %153 : vector<8x32xf32> to vector<1x8x32xf32>
    %c0_52 = arith.constant 0 : index
    %c0_53 = arith.constant 0 : index
    %c0_54 = arith.constant 0 : index
    %155 = vector.load %arg8[%c0_52, %c0_53, %c0_54] : memref<1x8x32xf32, #tpu.memory_space<vmem>>, vector<1x8x32xf32>
    tpu.vector_store %arg8[%c0_52, %c0_53, %c0_54], %154 {strides = array<i32>} : memref<1x8x32xf32, #tpu.memory_space<vmem>>, vector<1x8x32xf32>,
    return
  }
  func.func @transform_0(%arg0: i32, %arg1: i32) -> (i32, i32, i32) {
    %c0_i32 = arith.constant 0 : i32
    %c0_i32_0 = arith.constant 0 : i32
    %c0_i32_1 = arith.constant 0 : i32
    return %arg0, %c0_i32, %c0_i32_0 : i32, i32, i32
  }
  func.func @transform_1(%arg0: i32, %arg1: i32) -> (i32, i32, i32) {
    %c0_i32 = arith.constant 0 : i32
    %c0_i32_0 = arith.constant 0 : i32
    %c0_i32_1 = arith.constant 0 : i32
    return %arg1, %c0_i32, %c0_i32_0 : i32, i32, i32
  }
  func.func @transform_2(%arg0: i32, %arg1: i32) -> (i32, i32, i32) {
    %c0_i32 = arith.constant 0 : i32
    %c0_i32_0 = arith.constant 0 : i32
    %c0_i32_1 = arith.constant 0 : i32
    return %arg1, %c0_i32, %c0_i32_0 : i32, i32, i32
  }
  func.func @transform_3(%arg0: i32, %arg1: i32) -> (i32, i32, i32) {
    %c0_i32 = arith.constant 0 : i32
    %c0_i32_0 = arith.constant 0 : i32
    %c0_i32_1 = arith.constant 0 : i32
    return %arg1, %c0_i32, %c0_i32_0 : i32, i32, i32
  }
  func.func @transform_4(%arg0: i32, %arg1: i32) -> (i32, i32, i32) {
    %c0_i32 = arith.constant 0 : i32
    %c0_i32_0 = arith.constant 0 : i32
    %c0_i32_1 = arith.constant 0 : i32
    return %arg1, %c0_i32, %c0_i32_0 : i32, i32, i32
  }
  func.func @transform_5(%arg0: i32, %arg1: i32) -> (i32, i32, i32) {
    %c0_i32 = arith.constant 0 : i32
    %c0_i32_0 = arith.constant 0 : i32
    %c0_i32_1 = arith.constant 0 : i32
    return %arg1, %c0_i32, %c0_i32_0 : i32, i32, i32
  }
  func.func @transform_6(%arg0: i32, %arg1: i32) -> (i32, i32, i32) {
    %c0_i32 = arith.constant 0 : i32
    %c0_i32_0 = arith.constant 0 : i32
    %c0_i32_1 = arith.constant 0 : i32
    return %arg0, %c0_i32, %c0_i32_0 : i32, i32, i32
  }
}

</mosaic_0001>

<bundles_post_ra>
// kernel: transformer_forward.1
= control target key start
LH: loop header
LB: loop body
LE: loop exit
PB: predicated region body
PF: predicated region fallthrough
CT: control target
= control target key end

     0   :  { %11 = vsyncpa [#allocation3], 0  ;;  %s2371_s0 = inlined_call_operand.vmem [shape: f32[2,8,32], index: 0, kind: input, shape index: {}]   ;;  %s2372_s1 = inlined_call_operand.vmem [shape: f32[2,32,96], index: 1, kind: input, shape index: {}]   ;;  %s2373_s2 = inlined_call_operand.vmem [shape: f32[2,32,32], index: 2, kind: input, shape index: {}]   ;;  %s2374_s3 = inlined_call_operand.vmem [shape: f32[2,32,128], index: 3, kind: input, shape index: {}]   ;;  %s2375_s4 = inlined_call_operand.vmem [shape: f32[2,128,32], index: 4, kind: input, shape index: {}]   ;;  %s2376_s5 = inlined_call_operand.vmem [shape: f32[2,8,128], index: 5, kind: input, shape index: {}]   ;;  %s2377_s6 = inlined_call_operand.hbm [shape: f32[2,8,32], index: 6, kind: output, shape index: {}]  }
   0x1   :  { %13 = vsyncpa [#allocation3 + $0x1], 0  ;;  %s2068_s21 = smov 0   ;;  %s2070_s22 = smov 0  }
   0x2   :  { %s2072_s23 = smov 0   ;;  %s2074_s24 = smov 0  }
   0x3   :  { %s2076_s25 = smov 0   ;;  %s2078_s26 = smov 0  }
   0x4   :  { %s2080_s27 = smov 0   ;;  %s2082_s28 = smov 0  }
   0x5 LB: > { %2385 = sst [smem:[#allocation5_spill]] %s1985_s21  ;;  %s1573_s29 = sadd.s32 4294967295, %s2013_s28   ;;  %s2013_s28 = sphi %s2082_s28, %s19_s28   ;;  %s2009_s27 = sphi %s2080_s27, %s2403_s27   ;;  %s2005_s26 = sphi %s2078_s26, %s2402_s26   ;;  %s2001_s25 = sphi %s2076_s25, %s2401_s25   ;;  %s1997_s24 = sphi %s2074_s24, %s2400_s24   ;;  %s1993_s23 = sphi %s2072_s23, %s2406_s23   ;;  %s1989_s22 = sphi %s2070_s22, %s2405_s22   ;;  %s1985_s21 = sphi %s2068_s21, %s2404_s21  }
   0x6   : > { %2386 = sst [smem:[#allocation6_spill]] %s1993_s23  ;;  %s1574_s30 = sadd.s32 4294967294, %s2013_s28  }
   0x7   : > { %2387 = sst [smem:[#allocation7_spill]] %s2005_s26  ;;  %s28_s7 = sadd.s32 1, %s2005_s26 }
   0x8   : > { %2388 = sst [smem:[#allocation8_spill]] %s2009_s27  ;;  %p29_p0 = scmp.ge.s32.totalorder %s28_s7, 2 }
   0x9   : > { %s31_s8 = sadd.s32 1, %s2009_s27  ;;  %p204_p1 = scmp.ne.s32.totalorder %s1993_s23, %s1989_s22 }
   0xa   : > { %p205_p2 = scmp.eq.s32.totalorder %s1573_s29, 3  ;;  %s2408_s7 = smov (%p29_p0, %s28_s7), 0 }
   0xb   : > { %2389 = sst [smem:[#allocation9_spill]] %s2408_s7  ;;  %s2410_s8 = smov (!%p29_p0, %s31_s8), %s2009_s27 }
   0xc   : > { %p2117_p3 = por %p205_p2, %p204_p1  ;;  %p210_p4 = scmp.ne.s32.totalorder %s1989_s22, %s1985_s21 }
   0xd   : > { %p33_p5 = scmp.ge.s32.totalorder %s2410_s8, 2  ;;  %p211_p6 = scmp.eq.s32.totalorder %s1574_s30, 3 }
   0xe   : > { %p1577_p7 = scmp.ge.s32.totalorder %s2013_s28, 1  ;;  %p275_p8 = scmp.lt.s32.totalorder %s2013_s28, 5 }
   0xf   : > { %s2412_s8 = smov (%p33_p5, %s2410_s8), 0  ;;  %p2127_p9 = por %p211_p6, %p210_p4 }
  0x10   : > { %2391 = sst [smem:[#allocation10_spill]] %s2412_s8  ;;  %p276_p10 = pnand %p1577_p7, %p275_p8 }
  0x11   : > { %s2392_s10 = scalar_select %p2127_p9, 1, 0 }
  0x12   : > { %s191_s11 = ssub.s32 %s2009_s27, %s2412_s8  ;;  %s194_s12 = sadd.s32 1, %s1993_s23 }
  0x13   : > { %2393 = sst [smem:[#allocation11_spill]] %s2392_s10  ;;  %p192_p11 = scmp.eq.s32.totalorder %s191_s11, 0 }
  0x14   : > { %279 = sbr.rel (%p276_p10) target bundleno = 2419 (0x973), region = 44  ;;  %s2381_s14 = sand.u32 (!%p276_p10), 1, %s1989_s22  }
  0x15   : > { %s2135_s13 = scalar_select %p192_p11, %s1993_s23, %s194_s12  }
  0x16   : > { %p328_p12 = scmp.lt.s32.totalorder (!%p276_p10), %s2001_s25, 1  ;;  %s1578_s15 = sshll.u32 (!%p276_p10), %s2381_s14, 3 }
  0x17   : > { %2394 = sst [smem:[#allocation12_spill]] %s2135_s13  ;;  %p332_p13 = scmp.lt.s32.totalorder (!%p276_p10), %s1997_s24, 1 }
  0x18   : > { %s2170_s27 = scalar_lea.vmem (!%p276_p10), [#allocation2], %s1578_s15  ;;  %p1589_p0 = scmp.ne.s32.totalorder (!%p276_p10), %s1997_s24, 0 }
  0x1b   : > { %s329_s16 = scalar_select %p328_p12, %s2001_s25, 1 }
  0x1c   : > { %s333_s17 = scalar_select %p332_p13, %s1997_s24, 1 }
  0x1d   : > { %s1579_s18 = sshll.u32 %s329_s16, 3  ;;  %359 = sbr.rel (%p1589_p0) target bundleno = 36 (0x24), region = 48  ;;  %vm361_vm0 = vcmask (!%p1589_p0), 261120  }
  0x1e   : > { %s331_s29 = scalar_lea.vmem %s2371_s0, %s1579_s18  ;;  %s1609_s30 = sshll.u32 %s333_s17, 5 }
  0x1f   : > { %s336_s8 = scalar_lea.vmem %s2372_s1, %s1609_s30  ;;  %s2153_s26 = scalar_lea.vmem %s2373_s2, %s1609_s30  ;;  %v360_v0 = vld [vmem:[%s331_s29] sm:$0xff] (!%p1589_p0) }
  0x20   : > { %s2158_s23 = scalar_lea.vmem %s2374_s3, %s1609_s30  ;;  %s1612_s16 = sshll.u32 %s333_s17, 7  ;;  %362 = vst.msk [vmem:[%s2170_s27] sm:$0xff] (!%p1589_p0), %vm361_vm0, %v360_v0 }
  0x21   : > { %s2163_s18 = scalar_lea.vmem %s2375_s4, %s1612_s16  ;;  %s1588_s19 = sshll.u32 %s333_s17, 3 }
  0x22   : > { %s2168_s12 = scalar_lea.vmem %s2376_s5, %s1588_s19 }
  0x24 PF: > { %v365_v1 = vld [vmem:[%s336_s8] sm:$0xff]  ;;  %v366_v2 = vld [vmem:[%s336_s8 + $0x8] sm:$0xff]  ;;  %v367_v3 = vld [vmem:[%s336_s8 + $0x10] sm:$0xff]  ;;  %v2015_v4 = vmov 0.0|0.0   ;;  %vm2016_vm1 = vmmov 0   ;;  %v2017_v7 = vmov 0.0   ;;  %v369_v10 = vlaneseq }
  0x25   : > { %1769 = vmatprep.subr.bf16.mxu1 %v2015_v4  ;;  %v1770_v5 = vpack.c.bf16 %v366_v2, %v365_v1  ;;  %v368_v6 = vld [vmem:[%s336_s8 + $0x18] sm:$0xff]  ;;  %1669 = vmatprep.mubr.msk.f32.mxu1 %vm2016_vm1, %v2017_v7  ;;  %vm373_vm2 = vcmask 261120   ;;  %v2193_v13 = vld [vmem:[%s2168_s12] sm:$0xff]  ;;  %s2018_s21 = smov 96   ;;  %s2019_s24 = smov 120   ;;  %vm451_vm3 = vcmask 64512  }
  0x26   : > { %1682 = vmatprep.subr.mxu0 %v2017_v7  ;;  %1684 = vmatprep.mubr.msk.f32.mxu0 %vm2016_vm1, %v2017_v7  ;;  %v1773_v8 = vpack.c.bf16 %v368_v6, %v367_v3  ;;  %v2189_v11 = vshrl.u32 %v369_v10, 7  ;;  %s2020_s7 = smov 88   ;;  %s2021_s8 = smov 80   ;;  %v1127_v10 = vld [vmem:[%s2153_s26 + $0x8] sm:$0xff]  ;;  %vm1122_vm4 = vcmask 130048   ;;  %vm1124_vm5 = vcmask 195584  }
  0x27   : > { %1771 = vmatpush3.bf16.msra.mxu1 %v1770_v5  ;;  %v2182_v9 = vld [vmem:[%s2170_s27] sm:$0xff]  ;;  %s2022_s10 = smov 112   ;;  %s2023_s13 = smov 72  }
  0x28   : > { %1772 = vmatprep.subr.bf16.mxu1 %v2015_v4  ;;  %v371_v12 = vsub.s32 0, %v2189_v11  ;;  %s2024_s14 = smov 104   ;;  %s2025_s15 = smov 56  }
  0x29   : > { %s2026_s17 = smov 64   ;;  %s2027_s29 = smov 40  }
  0x2a   : > { %v372_v14 = vrot.slane %v2193_v13, %v371_v12  ;;  %s2028_s30 = smov 48   ;;  %s2029_s16 = smov 8   ;;  %v1128_v12 = vld [vmem:[%s2153_s26 + $0x10] sm:$0xff] }
  0x2b   : > { %1774 = vmatpush3.bf16.msra.mxu1 %v1773_v8  ;;  %v1126_v8 = vld [vmem:[%s2153_s26] sm:$0xff]  ;;  %s2030_s19 = smov 16  }
  0x2c   : > { %1672 = vmatprep.subr.mxu1 %v2017_v7 }
  0x2e   : > { %1670 = vmatmul.mubr.msk.f32.vlgmr.msra.gmra.mrb[0].mxu1 %vm373_vm2, %v2182_v9 }
  0x2f   : > { %1674 = vmatprep.mubr.msk.f32.mxu1 %vm2016_vm1, %v2017_v7 }
 0x101   : > { %v443_v15 = vpop.f32.mrb[0].mxu1 }
 0x102   : > { %v2196_v16 = vadd.f32 %v443_v15, %v372_v14  ;;  %v1671_v17 = vpop.f32.mrb[1].mxu1  ;;  %v1776_v14 = vpack.c.bf16 %v1127_v10, %v1126_v8  ;;  %v1129_v15 = vld [vmem:[%s2153_s26 + $0x18] sm:$0xff]  ;;  %s2031_s26 = smov 24   ;;  %v1327_v8 = vld [vmem:[%s2163_s18 + $0x68] sm:$0xff] }
 0x104   : > { %449 = vrot.lane.b32.xlu0 %v2196_v16, %s2018_s21  ;;  %v447_v18 = vmul.f32 0.35355338, %v2196_v16  ;;  %s2395_s21 = sand.u32 1, %s1989_s22  }
 0x106   : > { %614 = vrot.lane.b32.xlu1 %v447_v18, %s2019_s24  ;;  %s1430_s24 = scalar_lea.sflag [#allocation3], %s2395_s21 }
 0x108   : > { %616 = vrot.lane.b32.xlu0 %v2196_v16, %s2020_s7 }
 0x10a   : > { %781 = vrot.lane.b32.xlu1 %v2196_v16, %s2021_s8 }
 0x10c   : > { %779 = vrot.lane.b32.xlu0 %v447_v18, %s2022_s10 }
 0x10e   : > { %946 = vrot.lane.b32.xlu1 %v2196_v16, %s2023_s13 }
 0x110   : > { %944 = vrot.lane.b32.xlu0 %v447_v18, %s2024_s14 }
 0x176   : > { %v450_v19 = vpop.permute.xlu0 %449 }
 0x177   : > { %1673 = vmatpush3.xpose.msk.msra.mxu1 %vm451_vm3, %v450_v19 }
 0x178   : > { %v615_v20 = vpop.permute.xlu1 %614  ;;  %1677 = vmatprep.subr.mxu1 %v2017_v7 }
 0x17a   : > { %v617_v21 = vpop.permute.xlu0 %616  ;;  %1675 = vmatmul.mubr.msk.f32.vlgmr.msra.gmra.mrb[2].mxu1 %vm451_vm3, %v447_v18 }
 0x17b   : > { %1683 = vmatpush3.xpose.msk.msra.mxu0 %vm451_vm3, %v617_v21  ;;  %1679 = vmatprep.mubr.msk.f32.mxu1 %vm2016_vm1, %v2017_v7 }
 0x17c   : > { %v782_v22 = vpop.permute.xlu1 %781  ;;  %1692 = vmatprep.subr.mxu0 %v2017_v7 }
 0x17e   : > { %1685 = vmatmul.mubr.msk.f32.vlgmr.msra.gmra.mrb[0].mxu0 %vm451_vm3, %v615_v20  ;;  %v780_v23 = vpop.permute.xlu0 %779 }
 0x17f   : > { %1693 = vmatpush3.xpose.msk.msra.mxu0 %vm451_vm3, %v782_v22  ;;  %1694 = vmatprep.mubr.msk.f32.mxu0 %vm2016_vm1, %v2017_v7 }
 0x180   : > { %1702 = vmatprep.subr.mxu0 %v2017_v7  ;;  %v947_v24 = vpop.permute.xlu1 %946 }
 0x182   : > { %1695 = vmatmul.mubr.msk.f32.vlgmr.msra.gmra.mrb[2].mxu0 %vm451_vm3, %v780_v23  ;;  %v945_v25 = vpop.permute.xlu0 %944 }
 0x183   : > { %1703 = vmatpush3.xpose.msk.msra.mxu0 %vm451_vm3, %v947_v24  ;;  %1704 = vmatprep.mubr.msk.f32.mxu0 %vm2016_vm1, %v2017_v7 }
 0x184   : > { %1787 = vmatprep.subr.bf16.mxu0 %v2015_v4 }
 0x186   : > { %1705 = vmatmul.mubr.msk.f32.vlgmr.msra.gmra.mrb[4].mxu0 %vm451_vm3, %v945_v25 }
 0x187   : > { %1766 = vmatprep.mubr.msk.f32.mxu0 %vm2016_vm1, %v2017_v7 }
 0x24d   : > { %v523_v26 = vpop.f32.mrb[2].mxu1 }
 0x24e   : > { %v1676_v27 = vpop.f32.mrb[3].mxu1  ;;  %v527_v28 = vsel %vm451_vm3, %v523_v26, -inf }
 0x24f   : > { %528 = vmax.xlane.f32.xlu1 %v527_v28 }
 0x251   : > { %v688_v29 = vpop.f32.mrb[0].mxu0 }
 0x252   : > { %v1686_v30 = vpop.f32.mrb[1].mxu0  ;;  %v692_v31 = vsel %vm451_vm3, %v688_v29, -inf }
 0x253   : > { %693 = vmax.xlane.f32.xlu0 %v692_v31 }
 0x255   : > { %v853_v32 = vpop.f32.mrb[2].mxu0 }
 0x256   : > { %v1696_v33 = vpop.f32.mrb[3].mxu0  ;;  %v857_v34 = vsel %vm451_vm3, %v853_v32, -inf }
 0x257   : > { %858 = vmax.xlane.f32.xlu0 %v857_v34 }
 0x259   : > { %v1018_v35 = vpop.f32.mrb[4].mxu0 }
 0x25a   : > { %v1706_v36 = vpop.f32.mrb[5].mxu0  ;;  %v1022_v37 = vsel %vm451_vm3, %v1018_v35, -inf }
 0x260   : > { %702 = vrot.lane.b32.xlu1 %v2196_v16, %s2025_s15 }
 0x26d   : > { %537 = vrot.lane.b32.xlu0 %v2196_v16, %s2026_s17 }
 0x271   : > { %1032 = vrot.lane.b32.xlu0 %v2196_v16, %s2027_s29 }
 0x284   : > { %1023 = vmax.xlane.f32.xlu1 %v1022_v37 }
 0x295   : > { %867 = vrot.lane.b32.xlu1 %v2196_v16, %s2028_s30  ;;  %v1779_v16 = vpack.c.bf16 %v1129_v15, %v1128_v12 }
 0x2dc   : > { %v529_v38 = vpop.xlane.xlu1 %528 }
 0x2dd   : > { %v530_v39 = vsub.f32 %v523_v26, %v529_v38 }
 0x2df   : > { %v531_v40 = vmul.f32 1.442695, %v530_v39 }
 0x2e0   : > { %v694_v41 = vpop.xlane.xlu0 %693  ;;  %v703_v49 = vpop.permute.xlu1 %702 }
 0x2e1   : > { %1899 = vpow2.f32 %v531_v40  ;;  %v695_v42 = vsub.f32 %v688_v29, %v694_v41 }
 0x2e3   : > { %v696_v43 = vmul.f32 1.442695, %v695_v42 }
 0x2e4   : > { %v859_v44 = vpop.xlane.xlu0 %858 }
 0x2e5   : > { %1901 = vpow2.f32 %v696_v43  ;;  %v860_v45 = vsub.f32 %v853_v32, %v859_v44 }
 0x2e7   : > { %v861_v46 = vmul.f32 1.442695, %v860_v45 }
 0x2e8   : > { %v538_v47 = vpop.permute.xlu0 %537 }
 0x2e9   : > { %1903 = vpow2.f32 %v861_v46  ;;  %1678 = vmatpush3.msra.mxu1 %v538_v47  ;;  %v1232_v46 = vld [vmem:[%s2158_s23] sm:$0xff]  ;;  %v1233_v47 = vld [vmem:[%s2158_s23 + $0x8] sm:$0xff] }
 0x2ea   : > { %1687 = vmatprep.subr.mxu1 %v2017_v7 }
 0x2eb   : > { %v1900_v48 = vpop.eup %1899 }
 0x2ec   : > { %1680 = vmatmul.mubr.msk.f32.vlgmr.msra.gmra.mrb[4].mxu1 %vm451_vm3, %v1900_v48  ;;  %v533_v54 = vsel %vm451_vm3, %v1900_v48, 0.0  ;;  %v1033_v59 = vpop.permute.xlu0 %1032  ;;  %v1782_v48 = vpack.c.bf16 %v1233_v47, %v1232_v46  ;;  %v1420_v46 = vsub.s32 6, %v2189_v11  ;;  %v1425_v47 = vsub.s32 7, %v2189_v11 }
 0x2ed   : > { %1688 = vmatpush3.msra.mxu1 %v703_v49  ;;  %1689 = vmatprep.mubr.msk.f32.mxu1 %vm2016_vm1, %v2017_v7  ;;  %v1235_v49 = vld [vmem:[%s2158_s23 + $0x18] sm:$0xff] }
 0x2ee   : > { %1697 = vmatprep.subr.mxu1 %v2017_v7 }
 0x2ef   : > { %v1902_v50 = vpop.eup %1901 }
 0x2f0   : > { %1690 = vmatmul.mubr.msk.f32.vlgmr.msra.gmra.mrb[6].mxu1 %vm451_vm3, %v1902_v50  ;;  %v698_v51 = vsel %vm451_vm3, %v1902_v50, 0.0 }
 0x2f1   : > { %699 = vadd.xlane.f32.xlu1 %v698_v51  ;;  %1699 = vmatprep.mubr.msk.f32.mxu1 %vm2016_vm1, %v2017_v7  ;;  %v1314_v51 = vld [vmem:[%s2163_s18] sm:$0xff] }
 0x2f3   : > { %v1904_v52 = vpop.eup %1903 }
 0x2f4   : > { %v863_v53 = vsel %vm451_vm3, %v1904_v52, 0.0 }
 0x2f5   : > { %864 = vadd.xlane.f32.xlu0 %v863_v53  ;;  %534 = vadd.xlane.f32.xlu1 %v533_v54  ;;  %v1316_v53 = vld [vmem:[%s2163_s18 + $0x10] sm:$0xff] }
 0x311   : > { %v1024_v55 = vpop.xlane.xlu1 %1023 }
 0x312   : > { %v1025_v56 = vsub.f32 %v1018_v35, %v1024_v55  ;;  %v1132_v35 = vsub.s32 1, %v2189_v11  ;;  %v1317_v55 = vld [vmem:[%s2163_s18 + $0x18] sm:$0xff] }
 0x314   : > { %v1026_v57 = vmul.f32 1.442695, %v1025_v56  ;;  %v1133_v36 = vrot.slane %v2193_v13, %v1132_v35  ;;  %v1791_v56 = vpack.c.bf16 %v1317_v55, %v1316_v53 }
 0x315   : > { %v868_v58 = vpop.permute.xlu1 %867 }
 0x316   : > { %1905 = vpow2.f32 %v1026_v57  ;;  %1698 = vmatpush3.msra.mxu1 %v868_v58  ;;  %v1318_v57 = vld [vmem:[%s2163_s18 + $0x20] sm:$0xff]  ;;  %v1319_v58 = vld [vmem:[%s2163_s18 + $0x28] sm:$0xff] }
 0x317   : > { %1700 = vmatmul.mubr.msk.f32.vlgmr.msra.gmra.mrb[8].mxu1 %vm451_vm3, %v1904_v52  ;;  %1707 = vmatprep.subr.mxu1 %v2017_v7  ;;  %v1315_v52 = vld [vmem:[%s2163_s18 + $0x8] sm:$0xff] }
 0x318   : > { %1708 = vmatpush3.msra.mxu1 %v1033_v59  ;;  %1709 = vmatprep.mubr.msk.f32.mxu1 %vm2016_vm1, %v2017_v7  ;;  %v1788_v54 = vpack.c.bf16 %v1315_v52, %v1314_v51  ;;  %v1794_v59 = vpack.c.bf16 %v1319_v58, %v1318_v57 }
 0x319   : > { %1775 = vmatprep.subr.bf16.mxu1 %v2015_v4 }
 0x31a   : > { %1789 = vmatpush3.bf16.msra.mxu0 %v1788_v54 }
 0x31b   : > { %1790 = vmatprep.subr.bf16.mxu0 %v2015_v4 }
 0x31e   : > { %1792 = vmatpush3.bf16.msra.mxu0 %v1791_v56 }
 0x31f   : > { %1793 = vmatprep.subr.bf16.mxu0 %v2015_v4 }
 0x320   : > { %v1906_v60 = vpop.eup %1905 }
 0x321   : > { %1710 = vmatmul.mubr.msk.f32.vlgmr.msra.gmra.mrb[10].mxu1 %vm451_vm3, %v1906_v60  ;;  %v1028_v61 = vsel %vm451_vm3, %v1906_v60, 0.0  ;;  %v1320_v60 = vld [vmem:[%s2163_s18 + $0x30] sm:$0xff] }
 0x322   : > { %1029 = vadd.xlane.f32.xlu0 %v1028_v61  ;;  %1720 = vmatprep.mubr.msk.f32.mxu1 %vm2016_vm1, %v2017_v7  ;;  %v1321_v61 = vld [vmem:[%s2163_s18 + $0x38] sm:$0xff] }
 0x323   : > { %1777 = vmatpush3.bf16.msra.mxu1 %v1776_v14  ;;  %1795 = vmatpush3.bf16.msra.mxu0 %v1794_v59 }
 0x324   : > { %1778 = vmatprep.subr.bf16.mxu1 %v2015_v4  ;;  %1796 = vmatprep.subr.bf16.mxu0 %v2015_v4 }
 0x327   : > { %1780 = vmatpush3.bf16.msra.mxu1 %v1779_v16  ;;  %v1224_v16 = vsub.s32 2, %v2189_v11 }
 0x328   : > { %1781 = vmatprep.subr.bf16.mxu1 %v2015_v4 }
 0x37e   : > { %v700_v62 = vpop.xlane.xlu1 %699 }
 0x37f   : > { %1907 = vrcp.f32 %v700_v62  ;;  %v1797_v62 = vpack.c.bf16 %v1321_v61, %v1320_v60 }
 0x381   : > { %1798 = vmatpush3.bf16.msra.mxu0 %v1797_v62 }
 0x382   : > { %v865_v6 = vpop.xlane.xlu0 %864  ;;  %v535_v26 = vpop.xlane.xlu1 %534  ;;  %1799 = vmatprep.subr.bf16.mxu0 %v2015_v4 }
 0x383   : > { %1909 = vrcp.f32 %v865_v6  ;;  %v1326_v6 = vld [vmem:[%s2163_s18 + $0x60] sm:$0xff] }
 0x384   : > { %v1806_v10 = vpack.c.bf16 %v1327_v8, %v1326_v6 }
 0x389   : > { %v1908_v1 = vpop.eup %1907 }
 0x38d   : > { %v1910_v18 = vpop.eup %1909 }
 0x3af   : > { %v1030_v17 = vpop.xlane.xlu0 %1029 }
 0x3b0   : > { %1911 = vrcp.f32 %v1030_v17  ;;  %v1229_v17 = vsub.s32 3, %v2189_v11 }
 0x3b1   : > { %1913 = vrcp.f32 %v535_v26  ;;  %v1238_v26 = vsub.s32 4, %v2189_v11 }
 0x3ba   : > { %v1912_v22 = vpop.eup %1911 }
 0x3bb   : > { %v1914_v27 = vpop.eup %1913 }
 0x3bf   : > { %v609_v63 = vpop.f32.mrb[4].mxu1 }
 0x3c0   : > { %v1681_v0 = vpop.f32.mrb[5].mxu1  ;;  %v613_v30 = vmul.f32 %v1914_v27, %v609_v63  ;;  %v1322_v63 = vld [vmem:[%s2163_s18 + $0x40] sm:$0xff]  ;;  %v1239_v27 = vrot.slane %v2193_v13, %v1238_v26 }
 0x3c1   : > { %v1323_v0 = vld [vmem:[%s2163_s18 + $0x48] sm:$0xff] }
 0x3c3   : > { %v774_v2 = vpop.f32.mrb[6].mxu1 }
 0x3c4   : > { %v778_v3 = vmul.f32 %v1908_v1, %v774_v2  ;;  %v1691_v5 = vpop.f32.mrb[7].mxu1  ;;  %v1800_v1 = vpack.c.bf16 %v1323_v0, %v1322_v63  ;;  %v1324_v2 = vld [vmem:[%s2163_s18 + $0x50] sm:$0xff] }
 0x3c6   : > { %1110 = vrot.lane.b32.xlu0 %v778_v3, %s2029_s16  ;;  %v1325_v3 = vld [vmem:[%s2163_s18 + $0x58] sm:$0xff]  ;;  %1801 = vmatpush3.bf16.msra.mxu0 %v1800_v1 }
 0x3c7   : > { %v1803_v5 = vpack.c.bf16 %v1325_v3, %v1324_v2  ;;  %1802 = vmatprep.subr.bf16.mxu0 %v2015_v4 }
 0x3ca   : > { %1804 = vmatpush3.bf16.msra.mxu0 %v1803_v5 }
 0x3cb   : > { %1805 = vmatprep.subr.bf16.mxu0 %v2015_v4 }
 0x3ce   : > { %1807 = vmatpush3.bf16.msra.mxu0 %v1806_v10 }
 0x3cf   : > { %1808 = vmatprep.subr.bf16.mxu0 %v2015_v4 }
 0x3ea   : > { %v939_v19 = vpop.f32.mrb[8].mxu1 }
 0x3eb   : > { %v943_v20 = vmul.f32 %v1910_v18, %v939_v19  ;;  %v1701_v21 = vpop.f32.mrb[9].mxu1  ;;  %v1225_v18 = vrot.slane %v2193_v13, %v1224_v16 }
 0x3ec   : > { %v1230_v21 = vrot.slane %v2193_v13, %v1229_v17 }
 0x3ed   : > { %1114 = vrot.lane.b32.xlu1 %v943_v20, %s2030_s19 }
 0x3f4   : > { %v1104_v23 = vpop.f32.mrb[10].mxu1 }
 0x3f5   : > { %v1108_v24 = vmul.f32 %v1912_v22, %v1104_v23  ;;  %v1711_v25 = vpop.f32.mrb[11].mxu1 }
 0x3f7   : > { %1118 = vrot.lane.b32.xlu1 %v1108_v24, %s2031_s26  ;;  %v1328_v24 = vld [vmem:[%s2163_s18 + $0x70] sm:$0xff] }
 0x438   : > { %v1111_v28 = vpop.permute.xlu0 %1110 }
 0x439   : > { %v1121_v31 = vsel %vm451_vm3, %v613_v30, %v1111_v28 }
 0x45f   : > { %v1115_v29 = vpop.permute.xlu1 %1114 }
 0x460   : > { %v1123_v32 = vsel %vm1122_vm4, %v1121_v31, %v1115_v29 }
 0x469   : > { %v1119_v33 = vpop.permute.xlu1 %1118 }
 0x46a   : > { %v1125_v34 = vsel %vm1124_vm5, %v1123_v32, %v1119_v33  ;;  %v1332_v32 = vsub.s32 5, %v2189_v11 }
 0x46b   : > { %1721 = vmatmul.mubr.msk.f32.vlgmr.msra.gmra.mrb[12].mxu1 %vm373_vm2, %v1125_v34 }
 0x46c   : > { %1731 = vmatprep.mubr.msk.f32.mxu1 %vm2016_vm1, %v2017_v7  ;;  %1783 = vmatpush3.bf16.msra.mxu1 %v1782_v48  ;;  %v1333_v33 = vrot.slane %v2193_v13, %v1332_v32  ;;  %v1421_v48 = vrot.slane %v2193_v13, %v1420_v46 }
 0x46d   : > { %1784 = vmatprep.subr.bf16.mxu1 %v2015_v4  ;;  %v1329_v4 = vld [vmem:[%s2163_s18 + $0x78] sm:$0xff]  ;;  %s1443_s18 = sshll.u32 %s2170_s27, 4  ;;  %s2316_s18 = int_to_ptr.vmem [resolvable:$true] %s1443_s18 }
 0x46e   : > { %v1809_v25 = vpack.c.bf16 %v1329_v4, %v1328_v24  ;;  %s1919_s7 = scalar_lea.vmem %s2316_s18, 128 }
 0x46f   : > { %p1920_p1 = scmp.ne.s32.totalorder %s2316_s18, %s1919_s7 }
 0x470   : > { %1810 = vmatpush3.bf16.msra.mxu0 %v1809_v25 }
 0x471   : > { %p1921_p2 = pnand %p1920_p1, %p2117_p3 }
 0x473   : > { %p1922_p4 = pneg %p1921_p2 }
 0x53e   : > { %v1203_v37 = vpop.f32.mrb[12].mxu1 }
 0x53f   : > { %v1204_v38 = vadd.f32 %v1203_v37, %v1133_v36  ;;  %v1722_v39 = vpop.f32.mrb[13].mxu1 }
 0x541   : > { %v1207_v40 = vadd.f32 %v1204_v38, %v2182_v9  ;;  %v1234_v9 = vld [vmem:[%s2158_s23 + $0x10] sm:$0xff]  ;;  %s1606_s23 = sshll.u32 %s2001_s25, 7  ;;  %s2032_s25 = smov [#allocation2]  }
 0x542   : > { %v1785_v50 = vpack.c.bf16 %v1235_v49, %v1234_v9  ;;  %s2314_s12 = scalar_lea.hbm %s2377_s6, %s1606_s23  ;;  %s1923_s8 = sshll.u32 %s2032_s25, 4  ;;  %s1924_s8 = int_to_ptr.vmem [resolvable:$false] %s1923_s8 }
 0x543   : > { %v1208_v41 = vsel %vm373_vm2, %v1207_v40, 0.0  ;;  %s1925_s10 = scalar_lea.vmem %s1924_s8, 256  ;;  %p1926_p5 = scmp.lt.s32.totalorder %s2316_s18, %s1924_s8 }
 0x544   : > { %1209 = vadd.xlane.f32.xlu0 %v1208_v41  ;;  %1786 = vmatpush3.bf16.msra.mxu1 %v1785_v50  ;;  %v1426_v50 = vrot.slane %v2193_v13, %v1425_v47  ;;  %p1927_p6 = scmp.lt.s32.totalorder %s1925_s10, %s1919_s7 }
 0x546   : > { %p1928_p7 = por %p1927_p6, %p1926_p5 }
 0x548   : > { %p1929_p8 = pnand %p1928_p7, %p1922_p4 }
 0x5d1   : > { %v1210_v42 = vpop.xlane.xlu0 %1209 }
 0x5d2   : > { %v1212_v43 = vmul.f32 0.03125, %v1210_v42 }
 0x5d4   : > { %v1213_v7 = vsub.f32 %v1207_v40, %v1212_v43 }
 0x5d6   : > { %v1214_v44 = vmul.f32 %v1213_v7, %v1213_v7 }
 0x5d8   : > { %v1215_v45 = vsel %vm373_vm2, %v1214_v44, 0.0 }
 0x5d9   : > { %1216 = vadd.xlane.f32.xlu1 %v1215_v45 }
 0x666   : > { %v1217_v12 = vpop.xlane.xlu1 %1216 }
 0x667   : > { %v1218_v14 = vmul.f32 0.03125, %v1217_v12 }
 0x669   : > { %v1219_v15 = vadd.f32 1e-05, %v1218_v14 }
 0x66b   : > { %1915 = vrsqrt.f32 %v1219_v15 }
 0x675   : > { %v1916_v19 = vpop.eup %1915 }
 0x676   : > { %v1221_v20 = vmul.f32 %v1916_v19, %v1213_v7 }
 0x678   : > { %v1226_v22 = vmul.f32 %v1225_v18, %v1221_v20 }
 0x67a   : > { %v1231_v23 = vadd.f32 %v1230_v21, %v1226_v22 }
 0x67c   : > { %1732 = vmatmul.mubr.msk.f32.vlgmr.msra.gmra.mrb[14].mxu1 %vm373_vm2, %v1231_v23 }
 0x74f   : > { %v1309_v28 = vpop.f32.mrb[14].mxu1 }
 0x750   : > { %v1310_v29 = vadd.f32 %v1309_v28, %v1239_v27  ;;  %v1733_v30 = vpop.f32.mrb[15].mxu1 }
 0x752   : > { %v1313_v31 = vmax.f32 %v1310_v29, 0.0 }
 0x754   : > { %1767 = vmatmul.mubr.f32.vlgmr.msra.gmra.mrb[6].mxu0 %v1313_v31 }
 0x827   : > { %v1400_v34 = vpop.f32.mrb[6].mxu0 }
 0x828   : > { %v1401_v35 = vadd.f32 %v1400_v34, %v1333_v33  ;;  %v1768_v36 = vpop.f32.mrb[7].mxu0 }
 0x82a   : > { %v1404_v37 = vadd.f32 %v1401_v35, %v1231_v23 }
 0x82c   : > { %v1405_v38 = vsel %vm373_vm2, %v1404_v37, 0.0 }
 0x82d   : > { %1406 = vadd.xlane.f32.xlu0 %v1405_v38 }
 0x8ba   : > { %v1407_v39 = vpop.xlane.xlu0 %1406 }
 0x8bb   : > { %v1408_v40 = vmul.f32 0.03125, %v1407_v39 }
 0x8bd   : > { %v1409_v41 = vsub.f32 %v1404_v37, %v1408_v40 }
 0x8bf   : > { %v1410_v42 = vmul.f32 %v1409_v41, %v1409_v41 }
 0x8c1   : > { %v1411_v43 = vsel %vm373_vm2, %v1410_v42, 0.0 }
 0x8c2   : > { %1412 = vadd.xlane.f32.xlu0 %v1411_v43 }
 0x94f   : > { %v1413_v7 = vpop.xlane.xlu0 %1412 }
 0x950   : > { %v1414_v44 = vmul.f32 0.03125, %v1413_v7 }
 0x952   : > { %v1415_v45 = vadd.f32 1e-05, %v1414_v44 }
 0x954   : > { %1917 = vrsqrt.f32 %v1415_v45 }
 0x95e   : > { %v1918_v9 = vpop.eup %1917 }
 0x95f   : > { %v1417_v49 = vmul.f32 %v1918_v9, %v1409_v41 }
 0x961   : > { %v1422_v51 = vmul.f32 %v1421_v48, %v1417_v49 }
 0x963   : > { %v1427_v52 = vadd.f32 %v1426_v50, %v1422_v51 }
 0x965   : > { %1428 = vst.msk [vmem:[%s2170_s27] sm:$0xff] %vm373_vm2, %v1427_v52 }
 0x966   : > { %1932 = shalt.err (!%p1929_p8)
}
 0x967   : > { %s1933_s27 = scalar_lea.hbm %s2314_s12, 128  ;;  %s1937_s15 = scalar_lea.hbm %s2377_s6, 256 }
 0x968   : > { %p1934_p10 = scmp.ne.s32.totalorder %s2314_s12, %s1933_s27  ;;  %p1938_p13 = scmp.lt.u32.totalorder %s2314_s12, %s2377_s6 }
 0x969   : > { %p1939_p0 = scmp.lt.u32.totalorder %s1937_s15, %s1933_s27  ;;  %p1941_p2 = scmp.lt.u32.totalorder %s1933_s27, %s2314_s12 }
 0x96a   : > { %p1935_p11 = pnand %p1934_p10, %p2117_p3 }
 0x96b   : > { %p1940_p1 = por %p1939_p0, %p1938_p13 }
 0x96c   : > { %p1936_p12 = pneg %p1935_p11 }
 0x96d   : > { %p1942_p4 = por %p1941_p2, %p1940_p1 }
 0x96f   : > { %p1943_p5 = pnand %p1942_p4, %p1936_p12 }
 0x971   : > { %1946 = shalt.err (!%p1943_p5)
}
 0x972   : > { %1811 = dma.vmem_to_hbm [thread:$0]  (%p2117_p3), %s2316_s18, 128, %s2314_s12, %s1430_s24  }
 0x973 PF: > { %s2396_s30 = sld [smem:[#allocation5_spill]]  ;;  %p1817_p6 = scmp.ge.s32.totalorder %s2013_s28, 2 }
 0x975   : > { %p1814_p7 = pnand %p1817_p6, %p2127_p9 }
 0x979   : > { %s1455_s19 = sand.u32 1, %s2396_s30  }
 0x97a   : > { %s1456_s26 = scalar_lea.sflag [#allocation3], %s1455_s19 }
 0x97b   : > { %1980 = dma.done.wait (!%p1814_p7), %s1456_s26, 128  }
 0x97c   : > { %1982 = vsyncadd (!%p1814_p7), %s1456_s26, 4294967168  ;;  %s19_s28 = sadd.s32 1, %s2013_s28   ;;  %s2398_s23 = sld [smem:[#allocation6_spill]] }
 0x97d   : > { %p16_p8 = scmp.ge.s32.totalorder %s19_s28, 6   ;;  %s2399_s9 = sld [smem:[#allocation12_spill]] }
 0x97e   : > { %s2400_s24 = sld [smem:[#allocation7_spill]]  ;;  %s2401_s25 = sld [smem:[#allocation8_spill]] }
 0x97f   : > { %s2402_s26 = sld [smem:[#allocation9_spill]]  ;;  %s2403_s27 = sld [smem:[#allocation10_spill]] }
 0x980   : > { %s2404_s21 = smov %s1989_s22  ;;  %18 = sbr.rel (!%p16_p8) target bundleno = 5 (0x5), region = 98 }
 0x982   : > { %s2405_s22 = smov %s2398_s23 }
 0x983   : > { %s2406_s23 = smov %s2399_s9 }
 0x987   :  { %1461 = vsyncpa [#allocation3], 1 }
 0x988   :  { %1463 = vsyncpa [#allocation3 + $0x1], 1 }

</bundles_post_ra>
